<compile_context>
chip_gen: v6e
topology: v6e:2x2x1
jax: 0.10.0
libtpu: 0.0.40
codegen_flags: <defaults>
</compile_context>

<pallas_src>
import functools

import jax
import jax.numpy as jnp
import numpy as np
from jax.experimental import pallas as pl
from jax.experimental.pallas import tpu as pltpu

K = 3      # conv kernel size
C1 = 64    # conv1 out channels
C2 = 128   # conv2 out channels


def tls_kernel(Bt, L2, xt_ref, w14_ref, b14_ref, w2f_ref, b2_ref, out_ref,
               cols_ref, pp_ref):
    # xt_ref : (Bt, 4, L2) f32   xt[b, t, j] = x_pad[b, 2j + t]
    # w14_ref: (4, 128)  bf16    fused conv1 weight  [even parity | odd parity]
    # b14_ref: (1, 128)  f32     [b1 | b1]
    # w2f_ref: (192, 128) bf16   fused conv2 weight (3 taps stacked on K dim)
    # b2_ref : (1, 128)  f32
    # out_ref: (1, Bt, 128) f32
    # cols_ref: (Bt*L2, 4)      f32 VMEM scratch (im2col, positions on sublanes)
    # pp_ref  : (Bt*L2 + 2, 64) f32 VMEM scratch (row-padded pooled activations)
    M = Bt * L2

    # ---- im2col: tiny per-sample (4, L2) -> (L2, 4) transposes (XLU) ----
    for b in range(Bt):
        cols_ref[pl.ds(b * L2, L2), :] = jnp.transpose(xt_ref[b])

    # ---- Conv1d(1, 64, k3, p1) for both pool parities in ONE MXU dot ----
    h1 = jnp.dot(cols_ref[...].astype(jnp.bfloat16), w14_ref[...],
                 preferred_element_type=jnp.float32)            # (M, 128)
    h1 = jnp.maximum(h1 + b14_ref[...], 0.0)                    # ReLU (f32)
    # MaxPool1d(2): max over the two parities (lanes 0:64 vs 64:128).
    p = jnp.maximum(h1[:, :C1], h1[:, C1:])                     # (M, 64)

    # ---- +-1 row shifts via pre-zeroed padded scratch + iota row mask ----
    pp_ref[pl.ds(1, M), :] = p
    zrow = jnp.zeros((1, C1), jnp.float32)
    pp_ref[pl.ds(0, 1), :] = zrow
    pp_ref[pl.ds(M + 1, 1), :] = zrow
    left = pp_ref[pl.ds(0, M), :]             # row m -> p[m-1]
    right = pp_ref[pl.ds(2, M), :]            # row m -> p[m+1]
    j = jax.lax.broadcasted_iota(jnp.int32, (M, 1), 0) % L2
    left = jnp.where(j == 0, 0.0, left)           # zero at each sample start
    right = jnp.where(j == L2 - 1, 0.0, right)    # zero at each sample end

    # ---- Conv1d(64, 128, k3, p1): single fused K=192 MXU dot + ReLU ----
    x2 = jnp.concatenate([left, p, right], axis=-1).astype(jnp.bfloat16)
    h2 = jnp.dot(x2, w2f_ref[...], preferred_element_type=jnp.float32)
    h2 = jnp.maximum(h2 + b2_ref[...], 0.0)                     # (M, 128)

    # ---- AdaptiveAvgPool1d(1) + Flatten: per-sample mean over L2 rows ----
    inv = 1.0 / L2
    means = [jnp.sum(h2[b * L2:(b + 1) * L2, :], axis=0, keepdims=True) * inv
             for b in range(Bt)]
    out_ref[0] = jnp.concatenate(means, axis=0)                 # (Bt, 128)


def tls_forward(x, w1, b1, w2, b2):
    """x: (B, 1, L) float32 (PyTorch NCL).  Returns (B, 128) float32."""
    B, cin, L = x.shape
    assert cin == 1 and L % 2 == 0
    L2 = L // 2

    # Lane-dense taps: xt[b, t, j] = x_pad[b, 2j + t], t = 0..3 (pure XLA glue).
    xp = jnp.pad(x[:, 0, :], ((0, 0), (1, 1)))                        # (B, L+2)
    xt = jnp.stack([xp[:, t:t + 2 * L2:2] for t in range(4)], axis=1)  # (B,4,L2)

    # Batch tile: target M = Bt*L2 ~ 1024 MXU rows, cap the in-kernel unroll.
    Bt = int(min(B, 64, max(1, -(-1024 // L2))))
    nb = -(-B // Bt)
    Bpad = nb * Bt
    if Bpad != B:
        xt = jnp.pad(xt, ((0, Bpad - B), (0, 0), (0, 0)))

    # Fused conv1 weight: even parity uses taps 0..2, odd parity uses taps 1..3.
    w14 = jnp.zeros((4, 2 * C1), jnp.float32)
    w14 = w14.at[0:K, 0:C1].set(w1).at[1:K + 1, C1:2 * C1].set(w1)
    w14 = w14.astype(jnp.bfloat16)
    b14 = jnp.concatenate([b1, b1], axis=1)                           # (1, 128)
    # Fused conv2 weight: (K, C1, C2) -> (K*C1, C2), taps stacked on the K dim.
    w2f = w2.reshape(K * C1, C2).astype(jnp.bfloat16)

    out = pl.pallas_call(
        functools.partial(tls_kernel, Bt, L2),
        out_shape=jax.ShapeDtypeStruct((nb, Bt, C2), jnp.float32),
        grid_spec=pltpu.PrefetchScalarGridSpec(
            num_scalar_prefetch=0,
            grid=(nb,),
            in_specs=[
                pl.BlockSpec((Bt, 4, L2), lambda i: (i, 0, 0)),
                pl.BlockSpec((4, 2 * C1), lambda i: (0, 0)),
                pl.BlockSpec((1, 2 * C1), lambda i: (0, 0)),
                pl.BlockSpec((K * C1, C2), lambda i: (0, 0)),
                pl.BlockSpec((1, C2), lambda i: (0, 0)),
            ],
            out_specs=pl.BlockSpec((1, Bt, C2), lambda i: (i, 0, 0)),
            scratch_shapes=[
                pltpu.VMEM((Bt * L2, 4), jnp.float32),
                pltpu.VMEM((Bt * L2 + 2, C1), jnp.float32),
            ],
        ),
        compiler_params=pltpu.CompilerParams(
            dimension_semantics=("parallel",)),
    )(xt, w14, b14, w2f, b2)
    return out.reshape(Bpad, C2)[:B]


def tls_reference(x, w1, b1, w2, b2):
    """Pure-JAX (f32) reference mirroring the PyTorch forward pass."""
    B, _, L = x.shape
    L2 = L // 2
    x2 = x[:, 0, :]
    x_pad = jnp.pad(x2, ((0, 0), (1, 1)))
    cols = x_pad[:, jnp.arange(L)[:, None] + jnp.arange(K)[None, :]]   # (B, L, 3)
    h1 = jax.nn.relu(jnp.einsum("blk,kc->blc", cols, w1) + b1[0])      # (B, L, 64)
    p = jnp.max(h1.reshape(B, L2, 2, C1), axis=2)                      # MaxPool1d(2)
    p_pad = jnp.pad(p, ((0, 0), (1, 1), (0, 0)))
    h2 = sum(jnp.einsum("bld,dc->blc", p_pad[:, kk:kk + L2, :], w2[kk])
             for kk in range(K)) + b2[0]
    h2 = jax.nn.relu(h2)
    return jnp.mean(h2, axis=1)                                        # (B, 128)


if __name__ == "__main__":
    key = jax.random.PRNGKey(0)
    kx, k1, kb1, k2, kb2 = jax.random.split(key, 5)

    B, L = 2, 16
    x = jax.random.normal(kx, (B, 1, L), dtype=jnp.float32)

    # Deterministic synthetic parameters.
    # PyTorch conv1 weight (64, 1, 3) -> stored here as (3, 64) = w1[k, co].
    # PyTorch conv2 weight (128, 64, 3) -> stored here as (3, 64, 128) = w2[k, ci, co].
    w1 = jax.random.normal(k1, (K, C1), dtype=jnp.float32) * 0.3
    b1 = jax.random.normal(kb1, (1, C1), dtype=jnp.float32) * 0.1
    w2 = jax.random.normal(k2, (K, C1, C2), dtype=jnp.float32) * 0.1
    b2 = jax.random.normal(kb2, (1, C2), dtype=jnp.float32) * 0.1

    out = tls_forward(x, w1, b1, w2, b2)
    out = jax.block_until_ready(out)

    ref = tls_reference(x, w1, b1, w2, b2)
    # Tolerance reflects bf16 MXU operands (accumulation in f32).
    np.testing.assert_allclose(np.asarray(out), np.asarray(ref),
                               rtol=2e-2, atol=2e-2)
    assert out.shape == (B, C2)
    print("KERNEL_OK")
</pallas_src>

<mosaic_0001>
module attributes {stable_mosaic.version = 11 : i64} {
  func.func @tls_kernel(%arg0: i32, %arg1: memref<2x4x8xf32, #tpu.memory_space<vmem>>, %arg2: memref<4x128xbf16, #tpu.memory_space<vmem>>, %arg3: memref<1x128xf32, #tpu.memory_space<vmem>>, %arg4: memref<192x128xbf16, #tpu.memory_space<vmem>>, %arg5: memref<1x128xf32, #tpu.memory_space<vmem>>, %arg6: memref<1x2x128xf32, #tpu.memory_space<vmem>>, %arg7: memref<16x4xf32, #tpu.memory_space<vmem>>, %arg8: memref<18x64xf32, #tpu.memory_space<vmem>>) attributes {dimension_semantics = [#tpu.dimension_semantics<parallel>], iteration_bounds = array<i64: 1>, scalar_prefetch = 0 : i64, scratch_operands = 2 : i64, tpu.core_type = #tpu.core_type<tc>, window_params = [{transform_indices = @transform_0, window_bounds = array<i64: 2, 4, 8>}, {pipeline_mode = #tpu.pipeline_mode<synchronous>, transform_indices = @transform_1, window_bounds = array<i64: 4, 128>}, {pipeline_mode = #tpu.pipeline_mode<synchronous>, transform_indices = @transform_2, window_bounds = array<i64: 1, 128>}, {pipeline_mode = #tpu.pipeline_mode<synchronous>, transform_indices = @transform_3, window_bounds = array<i64: 192, 128>}, {pipeline_mode = #tpu.pipeline_mode<synchronous>, transform_indices = @transform_4, window_bounds = array<i64: 1, 128>}, {transform_indices = @transform_5, window_bounds = array<i64: 1, 2, 128>}]} {
    %c0 = arith.constant 0 : index
    %c0_0 = arith.constant 0 : index
    %c0_1 = arith.constant 0 : index
    %0 = vector.load %arg1[%c0, %c0_0, %c0_1] : memref<2x4x8xf32, #tpu.memory_space<vmem>>, vector<1x4x8xf32>
    %1 = vector.shape_cast %0 : vector<1x4x8xf32> to vector<4x8xf32>
    %2 = tpu.transpose %1, [1, 0] : vector<4x8xf32> -> vector<8x4xf32>
    %c0_2 = arith.constant 0 : index
    %c0_3 = arith.constant 0 : index
    %3 = vector.load %arg7[%c0_2, %c0_3] : memref<16x4xf32, #tpu.memory_space<vmem>>, vector<8x4xf32>
    tpu.vector_store %arg7[%c0_2, %c0_3], %2 {strides = array<i32>} : memref<16x4xf32, #tpu.memory_space<vmem>>, vector<8x4xf32>,
    %c1 = arith.constant 1 : index
    %c0_4 = arith.constant 0 : index
    %c0_5 = arith.constant 0 : index
    %4 = vector.load %arg1[%c1, %c0_4, %c0_5] : memref<2x4x8xf32, #tpu.memory_space<vmem>>, vector<1x4x8xf32>
    %5 = vector.shape_cast %4 : vector<1x4x8xf32> to vector<4x8xf32>
    %6 = tpu.transpose %5, [1, 0] : vector<4x8xf32> -> vector<8x4xf32>
    %c8 = arith.constant 8 : index
    %c0_6 = arith.constant 0 : index
    %7 = vector.load %arg7[%c8, %c0_6] : memref<16x4xf32, #tpu.memory_space<vmem>>, vector<8x4xf32>
    tpu.vector_store %arg7[%c8, %c0_6], %6 {strides = array<i32>} : memref<16x4xf32, #tpu.memory_space<vmem>>, vector<8x4xf32>,
    %c0_7 = arith.constant 0 : index
    %c0_8 = arith.constant 0 : index
    %8 = vector.load %arg7[%c0_7, %c0_8] : memref<16x4xf32, #tpu.memory_space<vmem>>, vector<16x4xf32>
    %9 = arith.truncf %8 : vector<16x4xf32> to vector<16x4xbf16>
    %c0_9 = arith.constant 0 : index
    %c0_10 = arith.constant 0 : index
    %10 = vector.load %arg2[%c0_9, %c0_10] : memref<4x128xbf16, #tpu.memory_space<vmem>>, vector<4x128xbf16>
    %cst = arith.constant dense<0.000000e+00> : vector<16x128xf32>
    %11 = tpu.matmul %9, %10, %cst {dimension_numbers = #tpu.dot_dimension_numbers<[1], [0], [0], [1], [0, 0, 1, 1], [], []>} : vector<16x4xbf16>, vector<4x128xbf16>, vector<16x128xf32> -> vector<16x128xf32>
    %c0_11 = arith.constant 0 : index
    %c0_12 = arith.constant 0 : index
    %12 = vector.load %arg3[%c0_11, %c0_12] : memref<1x128xf32, #tpu.memory_space<vmem>>, vector<1x128xf32>
    %13 = vector.broadcast %12 : vector<1x128xf32> to vector<16x128xf32>
    %14 = arith.addf %11, %13 : vector<16x128xf32>
    %cst_13 = arith.constant 0.000000e+00 : f32
    %15 = vector.broadcast %cst_13 : f32 to vector<16x128xf32>
    %16 = arith.maximumf %14, %15 : vector<16x128xf32>
    %17 = vector.extract_strided_slice %16 {offsets = [0, 0], sizes = [16, 64], strides = [1, 1]} : vector<16x128xf32> to vector<16x64xf32>
    %18 = vector.extract_strided_slice %16 {offsets = [0, 64], sizes = [16, 64], strides = [1, 1]} : vector<16x128xf32> to vector<16x64xf32>
    %19 = arith.maximumf %17, %18 : vector<16x64xf32>
    %c1_14 = arith.constant 1 : index
    %c0_15 = arith.constant 0 : index
    %20 = vector.load %arg8[%c1_14, %c0_15] : memref<18x64xf32, #tpu.memory_space<vmem>>, vector<16x64xf32>
    tpu.vector_store %arg8[%c1_14, %c0_15], %19 {strides = array<i32>} : memref<18x64xf32, #tpu.memory_space<vmem>>, vector<16x64xf32>,
    %cst_16 = arith.constant 0.000000e+00 : f32
    %21 = vector.broadcast %cst_16 : f32 to vector<1x64xf32>
    %c0_17 = arith.constant 0 : index
    %c0_18 = arith.constant 0 : index
    %22 = vector.load %arg8[%c0_17, %c0_18] : memref<18x64xf32, #tpu.memory_space<vmem>>, vector<1x64xf32>
    tpu.vector_store %arg8[%c0_17, %c0_18], %21 {strides = array<i32>} : memref<18x64xf32, #tpu.memory_space<vmem>>, vector<1x64xf32>,
    %c17 = arith.constant 17 : index
    %c0_19 = arith.constant 0 : index
    %23 = vector.load %arg8[%c17, %c0_19] : memref<18x64xf32, #tpu.memory_space<vmem>>, vector<1x64xf32>
    tpu.vector_store %arg8[%c17, %c0_19], %21 {strides = array<i32>} : memref<18x64xf32, #tpu.memory_space<vmem>>, vector<1x64xf32>,
    %c0_20 = arith.constant 0 : index
    %c0_21 = arith.constant 0 : index
    %24 = vector.load %arg8[%c0_20, %c0_21] : memref<18x64xf32, #tpu.memory_space<vmem>>, vector<16x64xf32>
    %c2 = arith.constant 2 : index
    %c0_22 = arith.constant 0 : index
    %25 = vector.load %arg8[%c2, %c0_22] : memref<18x64xf32, #tpu.memory_space<vmem>>, vector<16x64xf32>
    %26 = tpu.iota {dimensions = array<i32: 0>} : vector<16x1xi32>
    %c8_i32 = arith.constant 8 : i32
    %c0_i32 = arith.constant 0 : i32
    %27 = arith.cmpi eq, %c8_i32, %c0_i32 : i32
    %c1_i32 = arith.constant 1 : i32
    %28 = arith.select %27, %c1_i32, %c8_i32 : i32
    %29 = vector.broadcast %28 : i32 to vector<16x1xi32>
    %30 = arith.remsi %26, %29 : vector<16x1xi32>
    %c0_i32_23 = arith.constant 0 : i32
    %31 = vector.broadcast %c0_i32_23 : i32 to vector<16x1xi32>
    %32 = arith.cmpi ne, %30, %31 : vector<16x1xi32>
    %c0_i32_24 = arith.constant 0 : i32
    %33 = vector.broadcast %c0_i32_24 : i32 to vector<16x1xi32>
    %34 = arith.cmpi slt, %30, %33 : vector<16x1xi32>
    %c0_i32_25 = arith.constant 0 : i32
    %35 = arith.cmpi slt, %28, %c0_i32_25 : i32
    %36 = vector.broadcast %35 : i1 to vector<16x1xi1>
    %37 = vector.broadcast %36 : vector<16x1xi1> to vector<16x1xi1>
    %38 = arith.xori %34, %37 : vector<16x1xi1>
    %39 = arith.andi %38, %32 : vector<16x1xi1>
    %40 = vector.broadcast %28 : i32 to vector<16x1xi32>
    %41 = arith.addi %30, %40 : vector<16x1xi32>
    %42 = arith.select %39, %41, %30 : vector<16x1xi1>, vector<16x1xi32>
    %c0_i32_26 = arith.constant 0 : i32
    %43 = vector.broadcast %c0_i32_26 : i32 to vector<16x1xi32>
    %44 = arith.cmpi eq, %42, %43 : vector<16x1xi32>
    %cst_27 = arith.constant 0.000000e+00 : f32
    %45 = vector.shape_cast %44 : vector<16x1xi1> to vector<16x1xi1>
    %46 = vector.broadcast %45 : vector<16x1xi1> to vector<16x64xi1>
    %47 = vector.broadcast %cst_27 : f32 to vector<16x64xf32>
    %48 = arith.select %46, %47, %24 : vector<16x64xi1>, vector<16x64xf32>
    %c7_i32 = arith.constant 7 : i32
    %49 = vector.broadcast %c7_i32 : i32 to vector<16x1xi32>
    %50 = arith.cmpi eq, %42, %49 : vector<16x1xi32>
    %cst_28 = arith.constant 0.000000e+00 : f32
    %51 = vector.shape_cast %50 : vector<16x1xi1> to vector<16x1xi1>
    %52 = vector.broadcast %51 : vector<16x1xi1> to vector<16x64xi1>
    %53 = vector.broadcast %cst_28 : f32 to vector<16x64xf32>
    %54 = arith.select %52, %53, %25 : vector<16x64xi1>, vector<16x64xf32>
    %55 = tpu.concatenate %48, %19, %54 in 1 : vector<16x64xf32>, vector<16x64xf32>, vector<16x64xf32> -> vector<16x192xf32>
    %56 = arith.truncf %55 : vector<16x192xf32> to vector<16x192xbf16>
    %c0_29 = arith.constant 0 : index
    %c0_30 = arith.constant 0 : index
    %57 = vector.load %arg4[%c0_29, %c0_30] : memref<192x128xbf16, #tpu.memory_space<vmem>>, vector<192x128xbf16>
    %cst_31 = arith.constant dense<0.000000e+00> : vector<16x128xf32>
    %58 = tpu.matmul %56, %57, %cst_31 {dimension_numbers = #tpu.dot_dimension_numbers<[1], [0], [0], [1], [0, 0, 1, 1], [], []>} : vector<16x192xbf16>, vector<192x128xbf16>, vector<16x128xf32> -> vector<16x128xf32>
    %c0_32 = arith.constant 0 : index
    %c0_33 = arith.constant 0 : index
    %59 = vector.load %arg5[%c0_32, %c0_33] : memref<1x128xf32, #tpu.memory_space<vmem>>, vector<1x128xf32>
    %60 = vector.broadcast %59 : vector<1x128xf32> to vector<16x128xf32>
    %61 = arith.addf %58, %60 : vector<16x128xf32>
    %cst_34 = arith.constant 0.000000e+00 : f32
    %62 = vector.broadcast %cst_34 : f32 to vector<16x128xf32>
    %63 = arith.maximumf %61, %62 : vector<16x128xf32>
    %64 = vector.extract_strided_slice %63 {offsets = [0, 0], sizes = [8, 128], strides = [1, 1]} : vector<16x128xf32> to vector<8x128xf32>
    %cst_35 = arith.constant dense<0.000000e+00> : vector<128xf32>
    %65 = vector.multi_reduction <add>, %64, %cst_35 [0] : vector<8x128xf32> to vector<128xf32>
    %66 = vector.shape_cast %65 : vector<128xf32> to vector<1x128xf32>
    %cst_36 = arith.constant 1.250000e-01 : f32
    %67 = vector.broadcast %cst_36 : f32 to vector<1x128xf32>
    %68 = arith.mulf %66, %67 : vector<1x128xf32>
    %69 = vector.extract_strided_slice %63 {offsets = [8, 0], sizes = [8, 128], strides = [1, 1]} : vector<16x128xf32> to vector<8x128xf32>
    %cst_37 = arith.constant dense<0.000000e+00> : vector<128xf32>
    %70 = vector.multi_reduction <add>, %69, %cst_37 [0] : vector<8x128xf32> to vector<128xf32>
    %71 = vector.shape_cast %70 : vector<128xf32> to vector<1x128xf32>
    %cst_38 = arith.constant 1.250000e-01 : f32
    %72 = vector.broadcast %cst_38 : f32 to vector<1x128xf32>
    %73 = arith.mulf %71, %72 : vector<1x128xf32>
    %74 = tpu.concatenate %68, %73 in 0 : vector<1x128xf32>, vector<1x128xf32> -> vector<2x128xf32>
    %c0_39 = arith.constant 0 : index
    %c0_40 = arith.constant 0 : index
    %c0_41 = arith.constant 0 : index
    %75 = vector.load %arg6[%c0_39, %c0_40, %c0_41] : memref<1x2x128xf32, #tpu.memory_space<vmem>>, vector<1x2x128xf32>
    %76 = vector.shape_cast %75 : vector<1x2x128xf32> to vector<2x128xf32>
    %77 = vector.shape_cast %74 : vector<2x128xf32> to vector<1x2x128xf32>
    tpu.vector_store %arg6[%c0_39, %c0_40, %c0_41], %77 {strides = array<i32>} : memref<1x2x128xf32, #tpu.memory_space<vmem>>, vector<1x2x128xf32>,
    return
  }
  func.func @transform_0(%arg0: i32) -> (i32, i32, i32) {
    %c0_i32 = arith.constant 0 : i32
    %c0_i32_0 = arith.constant 0 : i32
    %c0_i32_1 = arith.constant 0 : i32
    return %arg0, %c0_i32, %c0_i32_0 : i32, i32, i32
  }
  func.func @transform_1(%arg0: i32) -> (i32, i32) {
    %c0_i32 = arith.constant 0 : i32
    %c0_i32_0 = arith.constant 0 : i32
    %c0_i32_1 = arith.constant 0 : i32
    return %c0_i32, %c0_i32_0 : i32, i32
  }
  func.func @transform_2(%arg0: i32) -> (i32, i32) {
    %c0_i32 = arith.constant 0 : i32
    %c0_i32_0 = arith.constant 0 : i32
    %c0_i32_1 = arith.constant 0 : i32
    return %c0_i32, %c0_i32_0 : i32, i32
  }
  func.func @transform_3(%arg0: i32) -> (i32, i32) {
    %c0_i32 = arith.constant 0 : i32
    %c0_i32_0 = arith.constant 0 : i32
    %c0_i32_1 = arith.constant 0 : i32
    return %c0_i32, %c0_i32_0 : i32, i32
  }
  func.func @transform_4(%arg0: i32) -> (i32, i32) {
    %c0_i32 = arith.constant 0 : i32
    %c0_i32_0 = arith.constant 0 : i32
    %c0_i32_1 = arith.constant 0 : i32
    return %c0_i32, %c0_i32_0 : i32, i32
  }
  func.func @transform_5(%arg0: i32) -> (i32, i32, i32) {
    %c0_i32 = arith.constant 0 : i32
    %c0_i32_0 = arith.constant 0 : i32
    %c0_i32_1 = arith.constant 0 : i32
    return %arg0, %c0_i32, %c0_i32_0 : i32, i32, i32
  }
}

</mosaic_0001>

<bundles_post_ra>
// kernel: tpu_custom_call.1
= control target key start
LH: loop header
LB: loop body
LE: loop exit
PB: predicated region body
PF: predicated region fallthrough
CT: control target
= control target key end

     0   :  { %10 = vsyncpa [#allocation5], 0  ;;  %s654_s0 = inlined_call_operand.hbm [shape: f32[2,4,8], index: 0, kind: input, shape index: {}]   ;;  %s655_s1 = inlined_call_operand.hbm [shape: bf16[4,128], index: 1, kind: input, shape index: {}]   ;;  %s656_s2 = inlined_call_operand.vmem [shape: f32[1,128], index: 2, kind: input, shape index: {}]   ;;  %s657_s3 = inlined_call_operand.hbm [shape: bf16[192,128], index: 3, kind: input, shape index: {}]   ;;  %s658_s4 = inlined_call_operand.vmem [shape: f32[1,128], index: 4, kind: input, shape index: {}]   ;;  %s659_s5 = inlined_call_operand.hbm [shape: f32[1,2,128], index: 5, kind: output, shape index: {}]  }
   0x1   :  { %11 = vsyncpa [#allocation8], 0 }
   0x2   :  { %12 = vsyncpa [#allocation6], 0  ;;  %s585_s18 = smov [#allocation7]   ;;  %s586_s20 = smov [#allocation4]  }
   0x3   :  { %s31_s19 = sshll.u32 %s585_s18, 4  ;;  %s18_s21 = sshll.u32 %s586_s20, 4  ;;  %s32_s19 = int_to_ptr.vmem [resolvable:$true] %s31_s19  ;;  %s19_s21 = int_to_ptr.vmem [resolvable:$true] %s18_s21 }
   0x4   :  { %s507_s22 = scalar_lea.vmem %s32_s19, 32  ;;  %p512_p1 = scmp.lt.s32.totalorder %s32_s19, %s32_s19 }
   0x5   :  { %p508_p0 = scmp.ne.s32.totalorder %s32_s19, %s507_s22  ;;  %p513_p2 = scmp.lt.s32.totalorder %s507_s22, %s507_s22 }
   0x7   :  { %p514_p3 = por %p513_p2, %p512_p1 }
   0x9   :  { %p515_p4 = pnand %p514_p3, %p508_p0 }
   0xb   :  { %518 = shalt.err (!%p515_p4)
}
   0xc   :  { %34 = dma.hbm_to_vmem [thread:$0]  %s655_s1, 32, %s32_s19, [#allocation8]  }
   0xd   :  { %s527_s25 = scalar_lea.vmem %s19_s21, 128  ;;  %p532_p6 = scmp.lt.s32.totalorder %s19_s21, %s19_s21 }
   0xe   :  { %p528_p5 = scmp.ne.s32.totalorder %s19_s21, %s527_s25  ;;  %p533_p7 = scmp.lt.s32.totalorder %s527_s25, %s527_s25 }
  0x10   :  { %p534_p8 = por %p533_p7, %p532_p6 }
  0x12   :  { %p535_p9 = pnand %p534_p8, %p528_p5 }
  0x14   :  { %538 = shalt.err (!%p535_p9)
}
  0x15   :  { %s587_s26 = smov 64   ;;  %s588_s27 = smov 4  }
  0x16   :  { %24 = dma.hbm_to_vmem [thread:$0]  %s654_s0, 128, %s19_s21, [#allocation5], %s587_s26, %s587_s26, %s588_s27  }
  0x17   :  { %s589_s30 = smov [#allocation9]  }
  0x18   :  { %s42_s6 = sshll.u32 %s589_s30, 4  ;;  %s43_s6 = int_to_ptr.vmem [resolvable:$true] %s42_s6 }
  0x19   :  { %s547_s7 = scalar_lea.vmem %s43_s6, 1536  ;;  %p552_p11 = scmp.lt.s32.totalorder %s43_s6, %s43_s6 }
  0x1a   :  { %p548_p10 = scmp.ne.s32.totalorder %s43_s6, %s547_s7  ;;  %p553_p12 = scmp.lt.s32.totalorder %s547_s7, %s547_s7 }
  0x1c   :  { %p554_p13 = por %p553_p12, %p552_p11 }
  0x1e   :  { %p555_p0 = pnand %p554_p13, %p548_p10 }
  0x20   :  { %558 = shalt.err (!%p555_p0)
}
  0x21   :  { %48 = dma.hbm_to_vmem [thread:$0]  %s657_s3, 1536, %s43_s6, [#allocation8], %s587_s26, %s587_s26, %s588_s27  }
  0x22   :  { %579 = dma.done.wait [#allocation5], 128  }
  0x23   :  { %580 = vsyncadd [#allocation5], 4294967168 }
  0x24   :  { %581 = dma.done.wait [#allocation8], 1568  }
  0x25   :  { %582 = vsyncadd [#allocation8], 4294965728  ;;  %v61_v0 = vld [vmem:[#allocation4] sm:$0xf]  ;;  %v97_v1 = vld [vmem:[#allocation4 + $0x4] sm:$0xf]  ;;  %v212_v32 = vlaneseq }
  0x26   :  { %62 = vxpose.xlu0.b32.start.end [1/1] (short) (narrow) %v61_v0, 8  ;;  %vm205_vm0 = vcmask 516096   ;;  %v134_v2 = vld [vmem:[#allocation7] sm:$0x3]  ;;  %vm145_vm1 = vcmask 1041408   ;;  %v590_v3 = vmov 0.0  }
  0x27   :  { %467 = vmatprep.subr.bf16.mxu0 %v590_v3  ;;  %206 = vst.msk [vmem:[#allocation3] sm:$0x1] %vm205_vm0, %v590_v3  ;;  %207 = vst.msk [vmem:[#allocation3 + $0x11] sm:$0x1] %vm205_vm0, %v590_v3  ;;  %v147_v4 = vsel %vm145_vm1, %v134_v2, 0  ;;  %vm591_vm2 = vmmov 0  }
  0x28   :  { %469 = vmatprep.mubr.msk.bf16.mxu0 %vm591_vm2, %v590_v3  ;;  %468 = vmatpush3.bf16.msra.mxu0 %v147_v4  ;;  %vm94_vm3 = vcmask 31744   ;;  %v449_v10 = vld [vmem:[%s656_s2] ss:$0 sm:$0xff]  ;;  %v487_v19 = vld [vmem:[#allocation9 + $0x38] sm:$0xff]   ;;  %v592_v20 = vmov 0   ;;  %v488_v21 = vld [vmem:[#allocation9 + $0x30] sm:$0xff]  }
  0x29   :  { %373 = vmatprep.subr.bf16.mxu1 %v592_v20  ;;  %v489_v22 = vld [vmem:[#allocation9 + $0x28] sm:$0xff]   ;;  %v490_v23 = vld [vmem:[#allocation9 + $0x20] sm:$0xff]   ;;  %v491_v24 = vld [vmem:[#allocation9 + $0x18] sm:$0xff]   ;;  %vm202_vm4 = vcmask 523264   ;;  %v213_v35 = vshrl.u32 %v212_v32, 7  ;;  %vm430_vm9 = vcmask 1040384  }
  0x2a   :  { %98 = vxpose.xlu0.b32.start.end [1/1] (short) (narrow) %v97_v1, 8  ;;  %374 = vmatpush1.bf16.msra.mxu1 %v487_v19  ;;  %v492_v25 = vld [vmem:[#allocation9 + $0x10] sm:$0xff]   ;;  %v493_v26 = vld [vmem:[#allocation9 + $0x8] sm:$0xff]   ;;  %v494_v27 = vld [vmem:[#allocation9] sm:$0xff]  }
  0x2b   :  { %375 = vmatprep.subr.bf16.mxu1 %v592_v20  ;;  %v495_v28 = vld [vmem:[#allocation9 + $0x58] sm:$0xff]   ;;  %v496_v29 = vld [vmem:[#allocation9 + $0x50] sm:$0xff]   ;;  %v497_v30 = vld [vmem:[#allocation9 + $0x48] sm:$0xff]   ;;  %v214_v37 = vadd.s32 8, %v213_v35  ;;  %v219_v41 = vand.u32 7, %v213_v35 }
  0x2c   :  { %v498_v31 = vld [vmem:[#allocation9 + $0x40] sm:$0xff]   ;;  %v451_v57 = vld [vmem:[%s658_s4] ss:$0 sm:$0xff]  ;;  %s593_s4 = smov [#allocation10]  }
  0x2d   :  { %v226_v40 = vand.u32 7, %v214_v37  ;;  %vm247_vm5 = vcmp.eq.s32.totalorder %v219_v41, 7  ;;  %vm239_vm7 = vcmp.eq.s32.totalorder %v219_v41, 0  ;;  %s439_s10 = sshll.u32 %s593_s4, 4  ;;  %s440_s10 = int_to_ptr.vmem [resolvable:$true] %s439_s10 }
  0x2e   :  { %376 = vmatpush1.bf16.msra.mxu1 %v488_v21  ;;  %s559_s11 = scalar_lea.vmem %s440_s10, 32  ;;  %p564_p2 = scmp.lt.s32.totalorder %s440_s10, %s440_s10 }
  0x2f   :  { %377 = vmatprep.subr.bf16.mxu1 %v592_v20  ;;  %vm248_vm6 = vcmp.eq.s32.totalorder %v226_v40, 7  ;;  %vm240_vm8 = vcmp.eq.s32.totalorder %v226_v40, 0  ;;  %p560_p1 = scmp.ne.s32.totalorder %s440_s10, %s559_s11  ;;  %p565_p3 = scmp.lt.s32.totalorder %s559_s11, %s559_s11 }
  0x31   :  { %p566_p4 = por %p565_p3, %p564_p2 }
  0x32   :  { %378 = vmatpush1.bf16.msra.mxu1 %v489_v22 }
  0x33   :  { %379 = vmatprep.subr.bf16.mxu1 %v592_v20  ;;  %p567_p5 = pnand %p566_p4, %p560_p1 }
  0x36   :  { %380 = vmatpush1.bf16.msra.mxu1 %v490_v23 }
  0x37   :  { %381 = vmatprep.subr.bf16.mxu1 %v592_v20 }
  0x3a   :  { %382 = vmatpush1.bf16.msra.mxu1 %v491_v24 }
  0x3b   :  { %383 = vmatprep.subr.bf16.mxu1 %v592_v20 }
  0x3e   :  { %384 = vmatpush1.bf16.msra.mxu1 %v492_v25 }
  0x3f   :  { %385 = vmatprep.subr.bf16.mxu1 %v592_v20 }
  0x42   :  { %386 = vmatpush1.bf16.msra.mxu1 %v493_v26 }
  0x43   :  { %387 = vmatprep.subr.bf16.mxu1 %v592_v20 }
  0x46   :  { %388 = vmatpush1.bf16.msra.mxu1 %v494_v27 }
  0x47   :  { %397 = vmatprep.subr.bf16.mxu1 %v592_v20 }
  0x4a   :  { %398 = vmatpush2.bf16.msra.mxu1 %v495_v28 }
  0x4b   :  { %399 = vmatprep.subr.bf16.mxu1 %v592_v20 }
  0x4e   :  { %400 = vmatpush2.bf16.msra.mxu1 %v496_v29 }
  0x4f   :  { %401 = vmatprep.subr.bf16.mxu1 %v592_v20 }
  0x52   :  { %402 = vmatpush2.bf16.msra.mxu1 %v497_v30 }
  0x53   :  { %403 = vmatprep.subr.bf16.mxu1 %v592_v20 }
  0x56   :  { %404 = vmatpush2.bf16.msra.mxu1 %v498_v31 }
  0xa2   :  { %v78_v5 = vpop.trf.xlu0 }
  0xa3   :  { %95 = vst.msk [vmem:[#allocation2] sm:$0xff] %vm94_vm3, %v78_v5 }
  0xa6   :  { %v114_v6 = vpop.trf.xlu0 }
  0xa7   :  { %130 = vst.msk [vmem:[#allocation2 + $0x8] sm:$0xff] %vm94_vm3, %v114_v6 }
  0xaa   :  { %v131_v7 = vld [vmem:[#allocation2] sm:$0xff] }
  0xae   :  { %v132_v8 = vld [vmem:[#allocation2 + $0x8] sm:$0xff] }
  0xaf   :  { %v133_v9 = vpack.c.bf16 %v132_v8, %v131_v7 }
  0xb1   :  { %470 = vmatmul.mubr.msk.bf16.vlgmr.msra.gmra.mxu0 %vm94_vm3, %v133_v9 }
 0x171   :  { %v183_v11 = vpop.f32.mrf.mxu0 }
 0x172   :  { %v184_v12 = vadd.f32 %v449_v10, %v183_v11 }
 0x173   :  { %v471_v13 = vpop.f32.mrf.mxu0 }
 0x174   :  { %v190_v14 = vmax.f32 %v184_v12, 0.0 }
 0x175   :  { %v186_v15 = vpop.f32.mrf.mxu0 }
 0x176   :  { %v187_v16 = vadd.f32 %v449_v10, %v186_v15  ;;  %194 = vrot.lane.b32.xlu1 %v190_v14, %s587_s26 }
 0x177   :  { %v472_v17 = vpop.f32.mrf.mxu0 }
 0x178   :  { %v191_v18 = vmax.f32 %v187_v16, 0.0 }
 0x17a   :  { %196 = vrot.lane.b32.xlu1 %v191_v18, %s587_s26 }
 0x1e8   :  { %v195_v33 = vpop.permute.xlu1 %194 }
 0x1e9   :  { %v200_v34 = vmax.f32 %v190_v14, %v195_v33 }
 0x1eb   :  { %203 = vst.msk [vmem:[#allocation3 + $0x1] sm:$0xff] %vm202_vm4, %v200_v34 }
 0x1ec   :  { %v197_v36 = vpop.permute.xlu1 %196 }
 0x1ed   :  { %v201_v38 = vmax.f32 %v191_v18, %v197_v36 }
 0x1ef   :  { %204 = vst.msk [vmem:[#allocation3 + $0x9] sm:$0xff] %vm202_vm4, %v201_v38  ;;  %v482_v39 = vpack.i.bf16 %v201_v38, %v200_v34 }
 0x1f1   :  { %483 = vrot.lane.b32.xlu0 %v482_v39, %s587_s26 }
 0x1f2   :  { %v208_v47 = vld [vmem:[#allocation3] sm:$0xff] }
 0x1f3   :  { %v245_v52 = vsel %vm239_vm7, 0.0, %v208_v47 }
 0x1f6   :  { %v210_v42 = vld [vmem:[#allocation3 + $0x2] sm:$0xff]  ;;  %v211_v43 = vld [vmem:[#allocation3 + $0xa] sm:$0xff] }
 0x1f7   :  { %v253_v44 = vsel %vm247_vm5, 0.0, %v210_v42  ;;  %v254_v45 = vsel %vm248_vm6, 0.0, %v211_v43  ;;  %v209_v48 = vld [vmem:[#allocation3 + $0x8] sm:$0xff] }
 0x1f8   :  { %v266_v46 = vpack.c.bf16 %v254_v45, %v253_v44  ;;  %v246_v53 = vsel %vm240_vm8, 0.0, %v209_v48 }
 0x1fa   :  { %464 = vmatprep.mubr.msk.bf16.mxu1 %vm202_vm4, %v266_v46 }
 0x263   :  { %v484_v49 = vpop.permute.xlu0 %483 }
 0x264   :  { %v486_v50 = vunpack.i.h.bf16 %v484_v49  ;;  %v485_v51 = vunpack.i.l.bf16 %v484_v49 }
 0x266   :  { %v263_v54 = vsel %vm202_vm4, %v245_v52, %v485_v51  ;;  %v264_v55 = vsel %vm202_vm4, %v246_v53, %v486_v50 }
 0x267   :  { %v265_v56 = vpack.c.bf16 %v264_v55, %v263_v54 }
 0x269   :  { %406 = vmatmul.mubr.bf16.vlgmr.msra.gmra.mxu1 %v265_v56 }
 0x329   :  { %v407_v58 = vpop.f32.mrf.mxu1 }
 0x32a   :  { %v408_v59 = vadd.f32 %v451_v57, %v407_v58 }
 0x32b   :  { %v409_v60 = vpop.f32.mrf.mxu1 }
 0x32c   :  { %v414_v61 = vmax.f32 %v408_v59, 0.0 }
 0x32d   :  { %v410_v62 = vpop.f32.mrf.mxu1 }
 0x32e   :  { %v416_v63 = vrot.slane %v414_v61, 4  ;;  %v411_v0 = vadd.f32 %v451_v57, %v410_v62 }
 0x32f   :  { %v412_v1 = vpop.f32.mrf.mxu1 }
 0x330   :  { %v417_v2 = vadd.f32 %v416_v63, %v414_v61  ;;  %v415_v3 = vmax.f32 %v411_v0, 0.0 }
 0x332   :  { %v418_v4 = vrot.slane %v417_v2, 2  ;;  %v423_v5 = vrot.slane %v415_v3, 4 }
 0x334   :  { %v419_v6 = vadd.f32 %v418_v4, %v417_v2  ;;  %v424_v7 = vadd.f32 %v423_v5, %v415_v3 }
 0x336   :  { %v420_v8 = vrot.slane %v419_v6, 1  ;;  %v425_v9 = vrot.slane %v424_v7, 2 }
 0x338   :  { %v426_v10 = vadd.f32 %v425_v9, %v424_v7  ;;  %v421_v11 = vadd.f32 %v420_v8, %v419_v6 }
 0x33a   :  { %v427_v12 = vrot.slane %v426_v10, 1  ;;  %v422_v14 = vmul.f32 0.125, %v421_v11 }
 0x33c   :  { %v428_v13 = vadd.f32 %v427_v12, %v426_v10 }
 0x33e   :  { %v429_v15 = vmul.f32 0.125, %v428_v13 }
 0x340   :  { %v431_v16 = vsel %vm430_vm9, %v422_v14, %v429_v15 }
 0x341   :  { %432 = vst [vmem:[#allocation10] sm:$0x3] %v431_v16 }
 0x342   :  { %570 = shalt.err (!%p567_p5)
}
 0x343   :  { %442 = dma.vmem_to_hbm [thread:$0]  %s440_s10, 32, %s659_s5, [#allocation6]  }
 0x344   :  { %583 = dma.done.wait [#allocation6], 32  }
 0x345   :  { %584 = vsyncadd [#allocation6], 4294967264 }
 0x346   :  { %446 = vsyncpa [#allocation5], 1 }
 0x347   :  { %447 = vsyncpa [#allocation8], 1 }
 0x348   :  { %448 = vsyncpa [#allocation6], 1 }

</bundles_post_ra>
